<compile_context>
chip_gen: v5e
topology: v5e:2x2
jax: 0.10.0
libtpu: 0.0.40
codegen_flags: <defaults>
</compile_context>

<pallas_src>
import functools

import jax
import jax.numpy as jnp
from jax.experimental import pallas as pl
from jax.experimental.pallas import tpu as pltpu

# ----------------------------- model config ---------------------------------
N_PAIRS = 4
N_FA = 2
HIDDEN_SIZES = (32, 32)
BATCH = 8

TX_POWER_MIN_DBM = -10.0
TX_POWER_MAX_DBM = 23.0
MIN_POWER_W = 10.0 ** ((TX_POWER_MIN_DBM - 30.0) / 10.0)
MAX_POWER_W = 10.0 ** ((TX_POWER_MAX_DBM - 30.0) / 10.0)
BN_EPS = 1e-5

# TODO(synk): discrete_power=True (softmax over power levels), n_fa == 1
# (constant fa_probs) and training-mode BatchNorm (batch statistics) are not
# implemented; this covers the default continuous-power eval-BN path.


# ------------------------------- kernel -------------------------------------
def _d2dnet_kernel(hidden_sizes, f_in, n_pairs, n_fa, max_cols,
                   x_ref, p_ref, out_ref):
    # x_ref:   (f_in, bb)             input tile, batch on the lane axis
    # p_ref:   (rows, max_cols + 1)   [ W^T | zero pad | bias column ] slab
    # out_ref: (n_pairs*(1+n_fa), bb) lane-dense output tile
    h = x_ref[...]                      # (f_in, bb), f32

    # hidden stack: (Linear with eval-BN folded in) -> ReLU, all (hs, bb)
    row = 0
    in_dim = f_in
    for hs in hidden_sizes:
        w = p_ref[row:row + hs, 0:in_dim]                  # (hs, in_dim)
        b = p_ref[row:row + hs, max_cols:max_cols + 1]     # (hs, 1) lane bcast
        row += hs
        h = jnp.dot(w, h, preferred_element_type=jnp.float32) + b
        h = jnp.maximum(h, 0.0)
        in_dim = hs

    # fused heads: one MXU push, rows = [power(4) | fa class0(4) | fa class1(4)]
    head_rows = n_pairs * (1 + n_fa)
    wh = p_ref[row:row + head_rows, 0:in_dim]
    bh = p_ref[row:row + head_rows, max_cols:max_cols + 1]
    logits = jnp.dot(wh, h, preferred_element_type=jnp.float32) + bh  # (12, bb)

    # power head: sigmoid scaled into [min_power_watts, max_power_watts]
    power = (jax.nn.sigmoid(logits[0:n_pairs, :])
             * (MAX_POWER_W - MIN_POWER_W) + MIN_POWER_W)

    # fa head: softmax over n_fa, rows are fa-major so slices are whole
    # sublane row-blocks.
    if n_fa == 2:
        l0 = logits[n_pairs:2 * n_pairs, :]
        l1 = logits[2 * n_pairs:3 * n_pairs, :]
        p1 = jax.nn.sigmoid(l1 - l0)          # == softmax over 2 classes
        fa_parts = [1.0 - p1, p1]
    else:
        parts = [logits[n_pairs * (1 + f):n_pairs * (2 + f), :]
                 for f in range(n_fa)]
        mx = parts[0]
        for f in range(1, n_fa):
            mx = jnp.maximum(mx, parts[f])
        exps = [jnp.exp(p - mx) for p in parts]
        denom = exps[0]
        for f in range(1, n_fa):
            denom = denom + exps[f]
        inv = pl.reciprocal(denom, approx=False)
        fa_parts = [e * inv for e in exps]

    # sublane-axis assembly -> one unmasked, lane-dense store per grid step
    out_ref[...] = jnp.concatenate([power] + fa_parts, axis=0)


# ------------------------------- wrapper -------------------------------------
def _round_up(x, m):
    return (x + m - 1) // m * m


def _choose_bb(padded_b, block_b):
    bb = min(block_b, padded_b)
    bb = max(128, (bb // 128) * 128)
    # Keep at least 2 grid steps when the batch allows it so the "parallel"
    # batch axis can be sharded across both v7x TensorCores.
    if padded_b >= 256 and bb > padded_b // 2:
        bb = max(128, ((padded_b // 2) // 128) * 128)
    return bb


def d2dnet_forward(x, params, block_b=4096):
    B, f_in = x.shape
    h_last = HIDDEN_SIZES[-1]
    head_rows = N_PAIRS * (1 + N_FA)

    # --- host-side weight prep (cheap, shapes are tiny) ----------------------
    # Fold eval-mode BN into the Linear; store transposed W^T (out, in).
    w_ts, b_s = [], []
    for (w, b, g, be, m, v) in params["hidden"]:
        scale = g * jax.lax.rsqrt(v + BN_EPS)
        w_ts.append((w * scale[None, :]).T)            # (hs, in)
        b_s.append((b - m) * scale + be)               # (hs,)

    # fa head: PyTorch pair-major columns -> fa-major rows of W^T
    wf_t = (params["wf"].reshape(h_last, N_PAIRS, N_FA)
            .transpose(2, 1, 0).reshape(N_FA * N_PAIRS, h_last))
    bf = params["bf"].reshape(N_PAIRS, N_FA).T.reshape(-1)

    # fuse both heads into a single (12, h_last) matmul
    wh_t = jnp.concatenate([params["wp"].T, wf_t], axis=0)
    bh = jnp.concatenate([params["bp"], bf], axis=0)

    # single parameter slab: rows = stacked layers, last column = bias
    max_cols = max([f_in] + list(HIDDEN_SIZES))
    blocks = []
    for wt, b in zip(w_ts + [wh_t], b_s + [bh]):
        r, c = wt.shape
        pad = jnp.zeros((r, max_cols - c), jnp.float32)
        blocks.append(jnp.concatenate([wt, pad, b[:, None]], axis=1))
    p_slab = jnp.concatenate(blocks, axis=0)           # (sum_rows, max_cols+1)

    # --- batch tiling (batch on the lane axis) --------------------------------
    padded_b = _round_up(B, 128)
    bb = _choose_bb(padded_b, block_b)
    total = _round_up(padded_b, bb)

    x_t = x.T                                          # (f_in, B)
    if total != B:
        x_t = jnp.pad(x_t, ((0, 0), (0, total - B)))

    kernel = functools.partial(_d2dnet_kernel, tuple(HIDDEN_SIZES),
                               int(f_in), N_PAIRS, N_FA, int(max_cols))

    out = pl.pallas_call(
        kernel,
        grid=(total // bb,),
        in_specs=[pl.BlockSpec((f_in, bb), lambda i: (0, i)),
                  pl.BlockSpec(p_slab.shape, lambda i: (0, 0))],
        out_specs=pl.BlockSpec((head_rows, bb), lambda i: (0, i)),
        out_shape=jax.ShapeDtypeStruct((head_rows, total), jnp.float32),
        compiler_params=pltpu.CompilerParams(
            dimension_semantics=("parallel",)),
    )(x_t, p_slab)

    power = out[:N_PAIRS, :B].T                        # (B, n_pairs)
    # fa-major rows (n_fa*n_pairs, B) -> (B, n_pairs, n_fa)
    fa_probs = out[N_PAIRS:, :B].reshape(N_FA, N_PAIRS, B).transpose(2, 1, 0)
    return power, fa_probs


# --------------------------- params / reference ------------------------------
def init_params(key):
    params = {"hidden": []}
    in_size = N_PAIRS * N_PAIRS
    for hs in HIDDEN_SIZES:
        key, k1, k2, k3, k4, k5, k6 = jax.random.split(key, 7)
        bound = float(1.0 / (in_size ** 0.5))
        w = jax.random.uniform(k1, (in_size, hs), jnp.float32, -bound, bound)
        b = jax.random.uniform(k2, (hs,), jnp.float32, -bound, bound)
        gamma = jax.random.uniform(k3, (hs,), jnp.float32, 0.5, 1.5)
        beta = jax.random.uniform(k4, (hs,), jnp.float32, -0.1, 0.1)
        mean = jax.random.uniform(k5, (hs,), jnp.float32, -0.5, 0.5)
        var = jax.random.uniform(k6, (hs,), jnp.float32, 0.5, 1.5)
        params["hidden"].append((w, b, gamma, beta, mean, var))
        in_size = hs

    h = HIDDEN_SIZES[-1]
    key, k1, k2, k3, k4 = jax.random.split(key, 5)
    bound = float(1.0 / (h ** 0.5))
    params["wp"] = jax.random.uniform(k1, (h, N_PAIRS), jnp.float32, -bound, bound)
    params["bp"] = jax.random.uniform(k2, (N_PAIRS,), jnp.float32, -bound, bound)
    params["wf"] = jax.random.uniform(k3, (h, N_PAIRS * N_FA), jnp.float32, -bound, bound)
    params["bf"] = jax.random.uniform(k4, (N_PAIRS * N_FA,), jnp.float32, -bound, bound)
    return params


def reference_forward(x, params):
    h = x
    for (w, b, g, be, m, v) in params["hidden"]:
        h = h @ w + b
        h = (h - m) / jnp.sqrt(v + BN_EPS) * g + be
        h = jnp.maximum(h, 0.0)
    power = (jax.nn.sigmoid(h @ params["wp"] + params["bp"])
             * (MAX_POWER_W - MIN_POWER_W) + MIN_POWER_W)
    fa_logits = (h @ params["wf"] + params["bf"]).reshape(-1, N_PAIRS, N_FA)
    fa_probs = jax.nn.softmax(fa_logits, axis=2)
    return power, fa_probs


# --------------------------------- main --------------------------------------
if __name__ == "__main__":
    key = jax.random.PRNGKey(0)
    pkey, xkey = jax.random.split(key)
    params = init_params(pkey)
    x = jax.random.normal(xkey, (BATCH, N_PAIRS * N_PAIRS), jnp.float32)

    power, fa_probs = d2dnet_forward(x, params)
    power = jax.block_until_ready(power)
    fa_probs = jax.block_until_ready(fa_probs)

    ref_power, ref_fa = reference_forward(x, params)
    assert power.shape == (BATCH, N_PAIRS)
    assert fa_probs.shape == (BATCH, N_PAIRS, N_FA)
    assert jnp.allclose(power, ref_power, atol=1e-5, rtol=1e-5)
    assert jnp.allclose(fa_probs, ref_fa, atol=1e-5, rtol=1e-5)
    print("KERNEL_OK")
</pallas_src>

<mosaic_0001>
module attributes {stable_mosaic.version = 11 : i64} {
  func.func @_d2dnet_kernel(%arg0: i32, %arg1: memref<16x128xf32, #tpu.memory_space<vmem>>, %arg2: memref<76x33xf32, #tpu.memory_space<vmem>>, %arg3: memref<12x128xf32, #tpu.memory_space<vmem>>) attributes {dimension_semantics = [#tpu.dimension_semantics<parallel>], iteration_bounds = array<i64: 1>, scalar_prefetch = 0 : i64, scratch_operands = 0 : i64, tpu.core_type = #tpu.core_type<tc>, window_params = [{transform_indices = @transform_0, window_bounds = array<i64: 16, 128>}, {pipeline_mode = #tpu.pipeline_mode<synchronous>, transform_indices = @transform_1, window_bounds = array<i64: 76, 33>}, {transform_indices = @transform_2, window_bounds = array<i64: 12, 128>}]} {
    %c0 = arith.constant 0 : index
    %c0_0 = arith.constant 0 : index
    %0 = vector.load %arg1[%c0, %c0_0] : memref<16x128xf32, #tpu.memory_space<vmem>>, vector<16x128xf32>
    %c0_1 = arith.constant 0 : index
    %c0_2 = arith.constant 0 : index
    %1 = vector.load %arg2[%c0_1, %c0_2] : memref<76x33xf32, #tpu.memory_space<vmem>>, vector<32x16xf32>
    %c0_3 = arith.constant 0 : index
    %c32 = arith.constant 32 : index
    %2 = vector.load %arg2[%c0_3, %c32] : memref<76x33xf32, #tpu.memory_space<vmem>>, vector<32x1xf32>
    %cst = arith.constant dense<0.000000e+00> : vector<32x128xf32>
    %3 = tpu.matmul %1, %0, %cst {dimension_numbers = #tpu.dot_dimension_numbers<[1], [0], [0], [1], [0, 0, 1, 1], [], []>} : vector<32x16xf32>, vector<16x128xf32>, vector<32x128xf32> -> vector<32x128xf32>
    %4 = vector.broadcast %2 : vector<32x1xf32> to vector<32x128xf32>
    %5 = arith.addf %3, %4 : vector<32x128xf32>
    %cst_4 = arith.constant 0.000000e+00 : f32
    %6 = vector.broadcast %cst_4 : f32 to vector<32x128xf32>
    %7 = arith.maximumf %5, %6 : vector<32x128xf32>
    %c32_5 = arith.constant 32 : index
    %c0_6 = arith.constant 0 : index
    %8 = vector.load %arg2[%c32_5, %c0_6] : memref<76x33xf32, #tpu.memory_space<vmem>>, vector<32x32xf32>
    %c32_7 = arith.constant 32 : index
    %c32_8 = arith.constant 32 : index
    %9 = vector.load %arg2[%c32_7, %c32_8] : memref<76x33xf32, #tpu.memory_space<vmem>>, vector<32x1xf32>
    %cst_9 = arith.constant dense<0.000000e+00> : vector<32x128xf32>
    %10 = tpu.matmul %8, %7, %cst_9 {dimension_numbers = #tpu.dot_dimension_numbers<[1], [0], [0], [1], [0, 0, 1, 1], [], []>} : vector<32x32xf32>, vector<32x128xf32>, vector<32x128xf32> -> vector<32x128xf32>
    %11 = vector.broadcast %9 : vector<32x1xf32> to vector<32x128xf32>
    %12 = arith.addf %10, %11 : vector<32x128xf32>
    %cst_10 = arith.constant 0.000000e+00 : f32
    %13 = vector.broadcast %cst_10 : f32 to vector<32x128xf32>
    %14 = arith.maximumf %12, %13 : vector<32x128xf32>
    %c64 = arith.constant 64 : index
    %c0_11 = arith.constant 0 : index
    %15 = vector.load %arg2[%c64, %c0_11] : memref<76x33xf32, #tpu.memory_space<vmem>>, vector<12x32xf32>
    %c64_12 = arith.constant 64 : index
    %c32_13 = arith.constant 32 : index
    %16 = vector.load %arg2[%c64_12, %c32_13] : memref<76x33xf32, #tpu.memory_space<vmem>>, vector<12x1xf32>
    %cst_14 = arith.constant dense<0.000000e+00> : vector<12x128xf32>
    %17 = tpu.matmul %15, %14, %cst_14 {dimension_numbers = #tpu.dot_dimension_numbers<[1], [0], [0], [1], [0, 0, 1, 1], [], []>} : vector<12x32xf32>, vector<32x128xf32>, vector<12x128xf32> -> vector<12x128xf32>
    %18 = vector.broadcast %16 : vector<12x1xf32> to vector<12x128xf32>
    %19 = arith.addf %17, %18 : vector<12x128xf32>
    %20 = vector.extract_strided_slice %19 {offsets = [0, 0], sizes = [4, 128], strides = [1, 1]} : vector<12x128xf32> to vector<4x128xf32>
    %21 = arith.negf %20 : vector<4x128xf32>
    %22 = math.exp %21 : vector<4x128xf32>
    %cst_15 = arith.constant 1.000000e+00 : f32
    %23 = vector.broadcast %cst_15 : f32 to vector<4x128xf32>
    %24 = arith.addf %23, %22 : vector<4x128xf32>
    %25 = arith.divf %23, %24 : vector<4x128xf32>
    %cst_16 = arith.constant 0.199426234 : f32
    %26 = vector.broadcast %cst_16 : f32 to vector<4x128xf32>
    %27 = arith.mulf %25, %26 : vector<4x128xf32>
    %cst_17 = arith.constant 9.99999974E-5 : f32
    %28 = vector.broadcast %cst_17 : f32 to vector<4x128xf32>
    %29 = arith.addf %27, %28 : vector<4x128xf32>
    %30 = vector.extract_strided_slice %19 {offsets = [4, 0], sizes = [4, 128], strides = [1, 1]} : vector<12x128xf32> to vector<4x128xf32>
    %31 = vector.extract_strided_slice %19 {offsets = [8, 0], sizes = [4, 128], strides = [1, 1]} : vector<12x128xf32> to vector<4x128xf32>
    %32 = arith.subf %31, %30 : vector<4x128xf32>
    %33 = arith.negf %32 : vector<4x128xf32>
    %34 = math.exp %33 : vector<4x128xf32>
    %cst_18 = arith.constant 1.000000e+00 : f32
    %35 = vector.broadcast %cst_18 : f32 to vector<4x128xf32>
    %36 = arith.addf %35, %34 : vector<4x128xf32>
    %37 = arith.divf %35, %36 : vector<4x128xf32>
    %cst_19 = arith.constant 1.000000e+00 : f32
    %38 = vector.broadcast %cst_19 : f32 to vector<4x128xf32>
    %39 = arith.subf %38, %37 : vector<4x128xf32>
    %40 = tpu.concatenate %29, %39, %37 in 0 : vector<4x128xf32>, vector<4x128xf32>, vector<4x128xf32> -> vector<12x128xf32>
    %c0_20 = arith.constant 0 : index
    %c0_21 = arith.constant 0 : index
    %41 = vector.load %arg3[%c0_20, %c0_21] : memref<12x128xf32, #tpu.memory_space<vmem>>, vector<12x128xf32>
    tpu.vector_store %arg3[%c0_20, %c0_21], %40 {strides = array<i32>} : memref<12x128xf32, #tpu.memory_space<vmem>>, vector<12x128xf32>,
    return
  }
  func.func @transform_0(%arg0: i32) -> (i32, i32) {
    %c0_i32 = arith.constant 0 : i32
    %c0_i32_0 = arith.constant 0 : i32
    return %c0_i32, %arg0 : i32, i32
  }
  func.func @transform_1(%arg0: i32) -> (i32, i32) {
    %c0_i32 = arith.constant 0 : i32
    %c0_i32_0 = arith.constant 0 : i32
    %c0_i32_1 = arith.constant 0 : i32
    return %c0_i32, %c0_i32_0 : i32, i32
  }
  func.func @transform_2(%arg0: i32) -> (i32, i32) {
    %c0_i32 = arith.constant 0 : i32
    %c0_i32_0 = arith.constant 0 : i32
    return %c0_i32, %arg0 : i32, i32
  }
}

</mosaic_0001>

<bundles_post_ra>
// kernel: tpu_custom_call.1
= control target key start
LH: loop header
LB: loop body
LE: loop exit
PB: predicated region body
PF: predicated region fallthrough
CT: control target
= control target key end

     0   :  { %v314_v3 = vmov 32   ;;  %vm38_vm0 = vcmask 130048   ;;  %s382_s0 = inlined_call_operand.vmem [shape: f32[16,128], index: 0, kind: input, shape index: {}]   ;;  %s383_s1 = inlined_call_operand.vmem [shape: f32[76,33], index: 1, kind: input, shape index: {}]   ;;  %s384_s2 = inlined_call_operand.hbm [shape: f32[12,128], index: 2, kind: output, shape index: {}]  }
   0x1   :  { %v13_v0 = vld [vmem:[%s382_s0 + $0x8] sm:$0xff]  ;;  %v17_v1 = vld [vmem:[%s383_s1 + $0x18] sm:$0xff]  ;;  %v12_v2 = vld [vmem:[%s382_s0] sm:$0xff]  ;;  %277 = vset.pattern.permute.xlu0 %v314_v3  ;;  %278 = vset.pattern.permute.xlu1 %v314_v3 }
   0x2   :  { %61 = vmatpush.msra.mxu0 %v13_v0  ;;  %v14_v4 = vld [vmem:[%s383_s1] sm:$0xff]  ;;  %v15_v5 = vld [vmem:[%s383_s1 + $0x8] sm:$0xff]  ;;  %35 = vperm.xlu0 %277, %v17_v1  }
   0x3   :  { %25 = vperm.xlu1 %278, %v15_v5  }
   0x4   :  { %62 = vmatpush.msra.mxu0 %v12_v2 }
   0x5   :  { %7 = vsyncpa [#allocation3], 0  ;;  %255 = vmatmul.msk.f32.vlgmr.msra.gmra.mxu0 %vm38_vm0, %v14_v4  ;;  %267 = vmatpush.msra.mxu1 %v13_v0  ;;  %v16_v6 = vld [vmem:[%s383_s1 + $0x10] sm:$0xff]  ;;  %v81_v7 = vld [vmem:[%s383_s1 + $0x28] sm:$0xff]  ;;  %vm104_vm1 = vcmask 261120   ;;  %s243_s7 = sshll.u32 %s384_s2, 4  ;;  %s244_s7 = int_to_ptr.hbm [resolvable:$true] %s243_s7 }
   0x6   :  { %279 = vset.pattern.permute.xlu2 %v314_v3  ;;  %v80_v8 = vld [vmem:[%s383_s1 + $0x20] sm:$0xff]  ;;  %v147_v9 = vld [vmem:[%s383_s1 + $0x48] sm:$0xf]  ;;  %v83_v11 = vld [vmem:[%s383_s1 + $0x38] sm:$0xff]  ;;  %vm233_vm10 = vcmask 1043456   ;;  %s316_s8 = smov 128  }
   0x7   :  { %268 = vmatpush.msra.mxu1 %v12_v2  ;;  %101 = vperm.xlu2 %279, %v83_v11   ;;  %v82_v18 = vld [vmem:[%s383_s1 + $0x30] sm:$0xff]  ;;  %v146_v22 = vld [vmem:[%s383_s1 + $0x40] sm:$0xff]  ;;  %s315_s1 = smov [#allocation2]   ;;  %s317_s9 = smov 8  }
   0x8   :  { %258 = vmatmul.msk.f32.vlgmr.msra.gmra.mxu1 %vm38_vm0, %v17_v1  ;;  %s241_s4 = sshll.u32 %s315_s1, 4  ;;  %s242_s4 = int_to_ptr.vmem [resolvable:$true] %s241_s4 }
   0xa   :  { %30 = vperm.xlu0 %277, %v16_v6  }
   0xb   :  { %20 = vperm.xlu1 %278, %v14_v4  }
   0xd   :  { %256 = vmatmul.msk.f32.gmra.mxu0 %vm38_vm0, %v15_v5 }
   0xf   :  { %96 = vperm.xlu2 %279, %v82_v18  }
  0x12   :  { %91 = vperm.xlu0 %277, %v81_v7  }
  0x13   :  { %86 = vperm.xlu1 %278, %v80_v8  }
  0x15   :  { %257 = vmatmul.msk.f32.gmra.mxu0 %vm38_vm0, %v16_v6 }
  0x17   :  { %150 = vperm.xlu2 %279, %v146_v22  }
  0x1a   :  { %155 = vperm.xlu0 %277, %v147_v9  }
  0x61   :  { %v102_v30 = vpop.permute.xlu2 %101 }
  0x69   :  { %v97_v32 = vpop.permute.xlu2 %96 }
  0x71   :  { %v151_v45 = vpop.permute.xlu2 %150 }
  0x74   :  { %v36_v12 = vpop.permute.xlu0 %35 }
  0x75   :  { %v26_v15 = vpop.permute.xlu1 %25 }
  0x7c   :  { %v31_v19 = vpop.permute.xlu0 %30 }
  0x7d   :  { %v21_v20 = vpop.permute.xlu1 %20 }
  0x82   :  { %v64_v10 = vpop.f32.mrf.mxu0 }
  0x83   :  { %v65_v25 = vadd.f32 %v64_v10, %v21_v20 }
  0x84   :  { %v92_v36 = vpop.permute.xlu0 %91 }
  0x85   :  { %v73_v13 = vpop.f32.mrf.mxu1  ;;  %v76_v28 = vmax.f32 %v65_v25, 0.0  ;;  %v87_v40 = vpop.permute.xlu1 %86 }
  0x86   :  { %v74_v14 = vadd.f32 %v73_v13, %v36_v12 }
  0x88   :  { %v79_v16 = vmax.f32 %v74_v14, 0.0 }
  0x8a   :  { %v67_v17 = vpop.f32.mrf.mxu0  ;;  %125 = vmatpush.msrb.mxu1 %v79_v16  ;;  %269 = vmatpush.msra.mxu3 %v79_v16 }
  0x8b   :  { %v68_v23 = vadd.f32 %v67_v17, %v26_v15 }
  0x8c   :  { %v156_v49 = vpop.permute.xlu0 %155 }
  0x8d   :  { %v77_v27 = vmax.f32 %v68_v23, 0.0 }
  0x92   :  { %v70_v21 = vpop.f32.mrf.mxu0 }
  0x93   :  { %v71_v24 = vadd.f32 %v70_v21, %v31_v19 }
  0x95   :  { %v78_v26 = vmax.f32 %v71_v24, 0.0 }
  0x97   :  { %126 = vmatpush.msrb.mxu1 %v78_v26  ;;  %270 = vmatpush.msra.mxu3 %v78_v26 }
  0x99   :  { %127 = vmatpush.msrb.mxu1 %v77_v27  ;;  %271 = vmatpush.msra.mxu3 %v77_v27 }
  0x9b   :  { %128 = vmatpush.msrb.mxu1 %v76_v28  ;;  %272 = vmatpush.msra.mxu3 %v76_v28 }
  0x9c   :  { %259 = vmatmul.msk.f32.vlgmr.msrb.gmra.mxu1 %vm104_vm1, %v80_v8  ;;  %260 = vmatmul.msk.f32.vlgmr.msra.gmra.mxu3 %vm104_vm1, %v81_v7 }
  0xa4   :  { %261 = vmatmul.msk.f32.gmra.mxu3 %vm104_vm1, %v82_v18 }
  0xac   :  { %262 = vmatmul.msk.f32.gmra.mxu3 %vm104_vm1, %v83_v11 }
 0x119   :  { %v130_v37 = vpop.f32.mrf.mxu1 }
 0x11a   :  { %v131_v41 = vadd.f32 %v130_v37, %v87_v40 }
 0x11c   :  { %v142_v44 = vmax.f32 %v131_v41, 0.0 }
 0x11f   :  { %v133_v29 = vpop.f32.mrf.mxu3 }
 0x120   :  { %v134_v38 = vadd.f32 %v133_v29, %v92_v36 }
 0x122   :  { %v143_v43 = vmax.f32 %v134_v38, 0.0 }
 0x127   :  { %v136_v31 = vpop.f32.mrf.mxu3 }
 0x128   :  { %v137_v34 = vadd.f32 %v136_v31, %v97_v32 }
 0x12a   :  { %v144_v42 = vmax.f32 %v137_v34, 0.0 }
 0x12f   :  { %v139_v33 = vpop.f32.mrf.mxu3 }
 0x130   :  { %v140_v35 = vadd.f32 %v139_v33, %v102_v30 }
 0x132   :  { %v145_v39 = vmax.f32 %v140_v35, 0.0 }
 0x134   :  { %174 = vmatpush.msra.mxu2 %v145_v39 }
 0x136   :  { %175 = vmatpush.msra.mxu2 %v144_v42 }
 0x138   :  { %176 = vmatpush.msra.mxu2 %v143_v43 }
 0x13a   :  { %177 = vmatpush.msra.mxu2 %v142_v44 }
 0x13b   :  { %263 = vmatmul.msk.f32.vlgmr.msra.gmra.mxu2 %vm104_vm1, %v146_v22 }
 0x143   :  { %264 = vmatmul.msk.f32.gmra.mxu2 %vm104_vm1, %v147_v9 }
 0x1be   :  { %v179_v46 = vpop.f32.mrf.mxu2 }
 0x1bf   :  { %v180_v47 = vadd.f32 %v179_v46, %v151_v45 }
 0x1c1   :  { %v265_v48 = vmul.f32 -1.442695, %v180_v47  ;;  %v207_v51 = vrot.slane %v180_v47, 4 }
 0x1c3   :  { %280 = vpow2.f32 %v265_v48 }
 0x1c6   :  { %v182_v50 = vpop.f32.mrf.mxu2 }
 0x1c7   :  { %v183_v52 = vadd.f32 %v182_v50, %v156_v49 }
 0x1c9   :  { %v281_v53 = vpop.eup %280  ;;  %v209_v54 = vsub.f32 %v183_v52, %v207_v51 }
 0x1ca   :  { %v188_v55 = vadd.f32 1.0, %v281_v53 }
 0x1cb   :  { %v266_v56 = vmul.f32 -1.442695, %v209_v54 }
 0x1cc   :  { %282 = vrcp.f32 %v188_v55  ;;  %v200_v1 = vand.u32 2147483648, %v188_v55  ;;  %vm194_vm3 = vweird.f32 %v188_v55  ;;  %v198_v2 = vand.u32 2147483647, %v188_v55 }
 0x1cd   :  { %284 = vpow2.f32 %v266_v56 }
 0x1ce   :  { %v201_v6 = vor.u32 1.1754944e-38, %v200_v1  ;;  %vm199_vm5 = vcmp.eq.f32.partialorder %v198_v2, 8.507059e+37 }
 0x1d2   :  { %v283_v57 = vpop.eup %282 }
 0x1d3   :  { %v285_v58 = vpop.eup %284  ;;  %v190_v59 = vmul.f32 %v283_v57, %v188_v55  ;;  %vm195_vm2 = vweird.f32 %v283_v57 }
 0x1d4   :  { %v213_v60 = vadd.f32 1.0, %v285_v58  ;;  %vm196_vm4 = vmor %vm194_vm3, %vm195_vm2 }
 0x1d5   :  { %v191_v61 = vsub.f32 1.0, %v190_v59 }
 0x1d6   :  { %286 = vrcp.f32 %v213_v60  ;;  %v225_v7 = vand.u32 2147483648, %v213_v60  ;;  %v223_v9 = vand.u32 2147483647, %v213_v60  ;;  %vm219_vm7 = vweird.f32 %v213_v60 }
 0x1d7   :  { %v192_v62 = vmul.f32 %v283_v57, %v191_v61 }
 0x1d8   :  { %v226_v12 = vor.u32 1.1754944e-38, %v225_v7  ;;  %vm224_vm9 = vcmp.eq.f32.partialorder %v223_v9, 8.507059e+37 }
 0x1d9   :  { %v193_v63 = vadd.f32 %v283_v57, %v192_v62 }
 0x1db   :  { %v197_v5 = vsel %vm196_vm4, %v283_v57, %v193_v63 }
 0x1dc   :  { %v287_v0 = vpop.eup %286  ;;  %v202_v10 = vsel %vm199_vm5, %v201_v6, %v197_v5 }
 0x1dd   :  { %v215_v3 = vmul.f32 %v287_v0, %v213_v60  ;;  %vm220_vm6 = vweird.f32 %v287_v0  ;;  %v204_v13 = vmul.f32 0.19942623, %v202_v10 }
 0x1de   :  { %vm221_vm8 = vmor %vm219_vm7, %vm220_vm6 }
 0x1df   :  { %v216_v4 = vsub.f32 1.0, %v215_v3  ;;  %v205_v17 = vadd.f32 0.0001, %v204_v13 }
 0x1e1   :  { %v217_v8 = vmul.f32 %v287_v0, %v216_v4 }
 0x1e3   :  { %v218_v11 = vadd.f32 %v287_v0, %v217_v8 }
 0x1e5   :  { %v222_v14 = vsel %vm221_vm8, %v287_v0, %v218_v11 }
 0x1e6   :  { %v227_v15 = vsel %vm224_vm9, %v226_v12, %v222_v14 }
 0x1e7   :  { %v229_v16 = vsub.f32 1.0, %v227_v15  ;;  %236 = vst [vmem:[#allocation2 + $0x8] sm:$0xf] %v227_v15 }
 0x1e9   :  { %v231_v18 = vrot.slane %v229_v16, 4 }
 0x1eb   :  { %v234_v19 = vsel %vm233_vm10, %v205_v17, %v231_v18 }
 0x1ec   :  { %235 = vst [vmem:[#allocation2] sm:$0xff] %v234_v19 }
 0x1ed   :  { %249 = dma.vmem_to_hbm [thread:$0]  %s242_s4, 256, %s244_s7, [#allocation3], %s316_s8, %s316_s8, %s317_s9  }
 0x1ee   :  { %312 = dma.done.wait [#allocation3], 256  }
 0x1ef   :  { %313 = vsyncadd [#allocation3], 4294967040 }
 0x1f0   :  { %254 = vsyncpa [#allocation3], 1 }

</bundles_post_ra>
